<compile_context>
chip_gen: v5e
topology: v5e:2x2
jax: 0.10.0
libtpu: 0.0.40
codegen_flags: <defaults>
</compile_context>

<pallas_src>
import functools
import math

import jax
import jax.numpy as jnp
from jax.experimental import pallas as pl
from jax.experimental.pallas import tpu as pltpu


def _round_up(x, m):
    return (x + m - 1) // m * m


def _tile(dim, pref):
    """Whole dim as a single block if it fits, otherwise the preferred tile."""
    return dim if dim <= pref else pref


# ----------------------------- tiled matmul ----------------------------------
def _matmul_kernel(a_ref, b_ref, o_ref, acc_ref):
    @pl.when(pl.program_id(2) == 0)
    def _():
        acc_ref[...] = jnp.zeros_like(acc_ref)

    acc_ref[...] += jnp.dot(a_ref[...], b_ref[...],
                            preferred_element_type=jnp.float32)

    @pl.when(pl.program_id(2) == pl.num_programs(2) - 1)
    def _():
        o_ref[...] = acc_ref[...].astype(o_ref.dtype)


def pallas_matmul(a, b, out_dtype=jnp.bfloat16, tm=256, tn=256, tk=512):
    M, K = a.shape
    K2, N = b.shape
    assert K == K2
    tm, tn, tk = _tile(M, tm), _tile(N, tn), _tile(K, tk)
    Mp, Np, Kp = _round_up(M, tm), _round_up(N, tn), _round_up(K, tk)
    a = a.astype(jnp.bfloat16)
    b = b.astype(jnp.bfloat16)
    if (Mp, Kp) != (M, K):
        a = jnp.pad(a, ((0, Mp - M), (0, Kp - K)))
    if (Kp, Np) != (K, N):
        b = jnp.pad(b, ((0, Kp - K), (0, Np - N)))
    out = pl.pallas_call(
        _matmul_kernel,
        out_shape=jax.ShapeDtypeStruct((Mp, Np), out_dtype),
        grid=(Mp // tm, Np // tn, Kp // tk),
        in_specs=[pl.BlockSpec((tm, tk), lambda i, j, k: (i, k)),
                  pl.BlockSpec((tk, tn), lambda i, j, k: (k, j))],
        out_specs=pl.BlockSpec((tm, tn), lambda i, j, k: (i, j)),
        scratch_shapes=[pltpu.VMEM((tm, tn), jnp.float32)],
        compiler_params=pltpu.CompilerParams(
            dimension_semantics=("parallel", "parallel", "arbitrary")),
    )(a, b)
    return out[:M, :N]


# --------------------- fused gate/up matmul + GeGLU ---------------------------
_GELU_C = math.sqrt(2.0 / math.pi)


def _gateup_geglu_kernel(x_ref, wg_ref, wu_ref, o_ref, accg_ref, accu_ref):
    @pl.when(pl.program_id(2) == 0)
    def _():
        accg_ref[...] = jnp.zeros_like(accg_ref)
        accu_ref[...] = jnp.zeros_like(accu_ref)

    x = x_ref[...]
    accg_ref[...] += jnp.dot(x, wg_ref[...], preferred_element_type=jnp.float32)
    accu_ref[...] += jnp.dot(x, wu_ref[...], preferred_element_type=jnp.float32)

    @pl.when(pl.program_id(2) == pl.num_programs(2) - 1)
    def _():
        g = accg_ref[...]
        gelu = 0.5 * g * (1.0 + jnp.tanh(_GELU_C * (g + 0.044715 * g * g * g)))
        o_ref[...] = (gelu * accu_ref[...]).astype(o_ref.dtype)


def pallas_gateup_geglu(x, w_gate, w_up, tm=256, tn=256, tk=512):
    M, K = x.shape
    _, N = w_gate.shape
    tm, tn, tk = _tile(M, tm), _tile(N, tn), _tile(K, tk)
    Mp, Np, Kp = _round_up(M, tm), _round_up(N, tn), _round_up(K, tk)
    x = x.astype(jnp.bfloat16)
    w_gate = w_gate.astype(jnp.bfloat16)
    w_up = w_up.astype(jnp.bfloat16)
    if (Mp, Kp) != (M, K):
        x = jnp.pad(x, ((0, Mp - M), (0, Kp - K)))
    if (Kp, Np) != (K, N):
        w_gate = jnp.pad(w_gate, ((0, Kp - K), (0, Np - N)))
        w_up = jnp.pad(w_up, ((0, Kp - K), (0, Np - N)))
    out = pl.pallas_call(
        _gateup_geglu_kernel,
        out_shape=jax.ShapeDtypeStruct((Mp, Np), jnp.bfloat16),
        grid=(Mp // tm, Np // tn, Kp // tk),
        in_specs=[pl.BlockSpec((tm, tk), lambda i, j, k: (i, k)),
                  pl.BlockSpec((tk, tn), lambda i, j, k: (k, j)),
                  pl.BlockSpec((tk, tn), lambda i, j, k: (k, j))],
        out_specs=pl.BlockSpec((tm, tn), lambda i, j, k: (i, j)),
        scratch_shapes=[pltpu.VMEM((tm, tn), jnp.float32),
                        pltpu.VMEM((tm, tn), jnp.float32)],
        compiler_params=pltpu.CompilerParams(
            dimension_semantics=("parallel", "parallel", "arbitrary")),
    )(x, w_gate, w_up)
    return out[:M, :N]


# ------------------------ Gemma RMSNorm (fused) -------------------------------
def _rmsnorm_kernel(x_ref, w_ref, o_ref, *, eps):
    x = x_ref[...].astype(jnp.float32)
    var = jnp.mean(x * x, axis=-1, keepdims=True)
    o_ref[...] = (x * jax.lax.rsqrt(var + eps) * w_ref[...]).astype(o_ref.dtype)


def pallas_rmsnorm(x, w_plus1, eps, tm=256):
    M, H = x.shape
    tm = _tile(M, tm)
    Mp = _round_up(M, tm)
    if Mp != M:
        x = jnp.pad(x, ((0, Mp - M), (0, 0)))
    out = pl.pallas_call(
        functools.partial(_rmsnorm_kernel, eps=eps),
        out_shape=jax.ShapeDtypeStruct((Mp, H), jnp.bfloat16),
        grid=(Mp // tm,),
        in_specs=[pl.BlockSpec((tm, H), lambda i: (i, 0)),
                  pl.BlockSpec((1, H), lambda i: (0, 0))],
        out_specs=pl.BlockSpec((tm, H), lambda i: (i, 0)),
        compiler_params=pltpu.CompilerParams(dimension_semantics=("parallel",)),
    )(x, w_plus1)
    return out[:M]


def _norm_add_norm_kernel(x_ref, r_ref, w1_ref, w2_ref, o_ref, res_ref, *, eps):
    # y = rmsnorm(x) * w1 ; res = y + residual ; out = rmsnorm(res) * w2
    x = x_ref[...].astype(jnp.float32)
    var1 = jnp.mean(x * x, axis=-1, keepdims=True)
    y = x * jax.lax.rsqrt(var1 + eps) * w1_ref[...]
    r = y + r_ref[...].astype(jnp.float32)
    res_ref[...] = r.astype(res_ref.dtype)
    var2 = jnp.mean(r * r, axis=-1, keepdims=True)
    o_ref[...] = (r * jax.lax.rsqrt(var2 + eps) * w2_ref[...]).astype(o_ref.dtype)


def pallas_norm_add_norm(x, residual, w1_plus1, w2_plus1, eps, tm=256):
    M, H = x.shape
    tm = _tile(M, tm)
    Mp = _round_up(M, tm)
    if Mp != M:
        x = jnp.pad(x, ((0, Mp - M), (0, 0)))
        residual = jnp.pad(residual, ((0, Mp - M), (0, 0)))
    out, res = pl.pallas_call(
        functools.partial(_norm_add_norm_kernel, eps=eps),
        out_shape=(jax.ShapeDtypeStruct((Mp, H), jnp.bfloat16),
                   jax.ShapeDtypeStruct((Mp, H), jnp.bfloat16)),
        grid=(Mp // tm,),
        in_specs=[pl.BlockSpec((tm, H), lambda i: (i, 0)),
                  pl.BlockSpec((tm, H), lambda i: (i, 0)),
                  pl.BlockSpec((1, H), lambda i: (0, 0)),
                  pl.BlockSpec((1, H), lambda i: (0, 0))],
        out_specs=(pl.BlockSpec((tm, H), lambda i: (i, 0)),
                   pl.BlockSpec((tm, H), lambda i: (i, 0))),
        compiler_params=pltpu.CompilerParams(dimension_semantics=("parallel",)),
    )(x, residual, w1_plus1, w2_plus1)
    return out[:M], res[:M]


# ------------------- flash attention over the packed batch --------------------
def _flash_attn_kernel(q_ref, k_ref, v_ref, qpos_ref, qseg_ref, kpos_ref,
                       kseg_ref, o_ref, m_sc, l_sc, acc_sc, *,
                       scale, softcap, window):
    kv_j = pl.program_id(2)

    @pl.when(kv_j == 0)
    def _():
        m_sc[...] = jnp.full_like(m_sc, -1e30)
        l_sc[...] = jnp.zeros_like(l_sc)
        acc_sc[...] = jnp.zeros_like(acc_sc)

    q = q_ref[0]                                   # [tq, d] bf16
    k = k_ref[0]                                   # [tk, d] bf16
    v = v_ref[0]                                   # [tk, d] bf16

    # q @ k^T on the MXU, f32 accumulation.
    s = jax.lax.dot_general(q, k, (((1,), (1,)), ((), ())),
                            preferred_element_type=jnp.float32) * scale
    if softcap is not None:                        # Gemma2 attn-logit soft-capping
        s = softcap * jnp.tanh(s * (1.0 / softcap))

    qpos = qpos_ref[...]                           # [tq, 1] int32
    qseg = qseg_ref[...]
    kpos = kpos_ref[...]                           # [1, tk] int32
    kseg = kseg_ref[...]
    mask = jnp.logical_and(qseg == kseg, kpos <= qpos)   # same sequence + causal
    if window is not None:                               # sliding-window layers
        mask = jnp.logical_and(mask, (qpos - kpos) < window)
    s = jnp.where(mask, s, -1e30)

    # online softmax
    m_prev = m_sc[...]
    m_new = jnp.maximum(m_prev, jnp.max(s, axis=-1, keepdims=True))
    alpha = jnp.exp(m_prev - m_new)
    p = jnp.exp(s - m_new)
    l_sc[...] = alpha * l_sc[...] + jnp.sum(p, axis=-1, keepdims=True)
    acc_sc[...] = alpha * acc_sc[...] + jnp.dot(
        p.astype(jnp.bfloat16), v, preferred_element_type=jnp.float32)
    m_sc[...] = m_new

    @pl.when(kv_j == pl.num_programs(2) - 1)
    def _():
        o_ref[0] = (acc_sc[...] / l_sc[...]).astype(o_ref.dtype)


def pallas_flash_attention(q, k, v, positions, seg_ids, *, scale, softcap,
                           window, q_tile=128):
    # q: [T, H, D], k/v: [T, KV, D] (f32 after RoPE); packed ragged batch.
    T, H, D = q.shape
    KV = k.shape[1]
    rep = H // KV
    t8 = _round_up(T, 8)
    tile = t8 if t8 <= q_tile else q_tile
    Tp = _round_up(T, tile)
    pad = Tp - T

    qh = jnp.transpose(q, (1, 0, 2)).astype(jnp.bfloat16)   # [H, T, D]
    kh = jnp.transpose(k, (1, 0, 2)).astype(jnp.bfloat16)   # [KV, T, D]
    vh = jnp.transpose(v, (1, 0, 2)).astype(jnp.bfloat16)
    pos = positions.astype(jnp.int32)
    seg = seg_ids.astype(jnp.int32)
    if pad:
        qh = jnp.pad(qh, ((0, 0), (0, pad), (0, 0)))
        kh = jnp.pad(kh, ((0, 0), (0, pad), (0, 0)))
        vh = jnp.pad(vh, ((0, 0), (0, pad), (0, 0)))
        pos = jnp.pad(pos, (0, pad))
    qseg = jnp.pad(seg, (0, pad), constant_values=-2)   # padded queries: no match
    kseg = jnp.pad(seg, (0, pad), constant_values=-1)   # padded keys: no match

    kernel = functools.partial(_flash_attn_kernel, scale=scale,
                               softcap=softcap, window=window)
    out = pl.pallas_call(
        kernel,
        out_shape=jax.ShapeDtypeStruct((H, Tp, D), jnp.bfloat16),
        grid=(H, Tp // tile, Tp // tile),
        in_specs=[
            pl.BlockSpec((1, tile, D), lambda h, i, j: (h, i, 0)),
            # GQA: query head h reads kv head h // rep — no jnp.repeat of K/V.
            pl.BlockSpec((1, tile, D), lambda h, i, j: (h // rep, j, 0)),
            pl.BlockSpec((1, tile, D), lambda h, i, j: (h // rep, j, 0)),
            pl.BlockSpec((tile, 1), lambda h, i, j: (i, 0)),
            pl.BlockSpec((tile, 1), lambda h, i, j: (i, 0)),
            pl.BlockSpec((1, tile), lambda h, i, j: (0, j)),
            pl.BlockSpec((1, tile), lambda h, i, j: (0, j)),
        ],
        out_specs=pl.BlockSpec((1, tile, D), lambda h, i, j: (h, i, 0)),
        scratch_shapes=[pltpu.VMEM((tile, 1), jnp.float32),
                        pltpu.VMEM((tile, 1), jnp.float32),
                        pltpu.VMEM((tile, D), jnp.float32)],
        compiler_params=pltpu.CompilerParams(
            dimension_semantics=("parallel", "parallel", "arbitrary")),
    )(qh, kh, vh,
      pos.reshape(Tp, 1), qseg.reshape(Tp, 1),
      pos.reshape(1, Tp), kseg.reshape(1, Tp))

    return jnp.transpose(out, (1, 0, 2)).reshape(Tp, H * D)[:T]


# ------------------------------ JAX glue --------------------------------------
def apply_rope(x, positions, theta):
    # x: [T, heads, head_dim]; NeoX-style rotation over the full head_dim.
    d = x.shape[-1]
    half = d // 2
    inv_freq = 1.0 / (theta ** (jnp.arange(0, half, dtype=jnp.float32) * 2.0 / d))
    freqs = positions.astype(jnp.float32)[:, None] * inv_freq[None, :]
    cos = jnp.cos(freqs)[:, None, :]
    sin = jnp.sin(freqs)[:, None, :]
    x = x.astype(jnp.float32)
    x1, x2 = x[..., :half], x[..., half:]
    return jnp.concatenate([x1 * cos - x2 * sin, x2 * cos + x1 * sin], axis=-1)


def self_attention(x, positions, seg_ids, layer, layer_idx, cfg):
    T = x.shape[0]
    H, KV, D = cfg["num_heads"], cfg["num_kv_heads"], cfg["head_dim"]
    qkv = pallas_matmul(x, layer["qkv"], out_dtype=jnp.float32)   # [T, (H+2KV)*D]
    q = qkv[:, :H * D].reshape(T, H, D)
    k = qkv[:, H * D:(H + KV) * D].reshape(T, KV, D)
    v = qkv[:, (H + KV) * D:].reshape(T, KV, D)
    q = apply_rope(q, positions, cfg["rope_theta"])
    k = apply_rope(k, positions, cfg["rope_theta"])

    use_sw = (layer_idx % 2 == 0) and cfg["sliding_window"] is not None
    window = cfg["sliding_window"] if use_sw else None
    scale = cfg["query_pre_attn_scalar"] ** -0.5

    attn = pallas_flash_attention(q, k, v, positions, seg_ids, scale=scale,
                                  softcap=cfg["attn_logit_softcapping"],
                                  window=window)
    return pallas_matmul(attn, layer["o"], out_dtype=jnp.bfloat16)


def forward(params, input_ids, positions, seg_ids, seq_lens, cfg):
    eps = cfg["rms_norm_eps"]
    nl = cfg["num_layers"]

    def gw(w):  # fold Gemma's (1 + weight) once, as a (1, hidden) f32 row
        return (1.0 + w.astype(jnp.float32)).reshape(1, -1)

    # Gemma2Model: embedding * sqrt(hidden_size)
    h = params["embed"][input_ids].astype(jnp.float32) * (cfg["hidden_size"] ** 0.5)
    h = h.astype(jnp.bfloat16)
    residual = h
    x = pallas_rmsnorm(h, gw(params["layers"][0]["input_ln"]), eps)

    for i, layer in enumerate(params["layers"]):
        attn_out = self_attention(x, positions, seg_ids, layer, i, cfg)
        # post_attention_layernorm -> (+ residual) -> pre_feedforward_layernorm
        x, residual = pallas_norm_add_norm(
            attn_out, residual, gw(layer["post_attn_ln"]), gw(layer["pre_ff_ln"]), eps)
        # fused gate/up matmul + GeGLU epilogue, then down projection
        mlp = pallas_gateup_geglu(x, layer["gate"], layer["up"])
        mlp = pallas_matmul(mlp, layer["down"], out_dtype=jnp.bfloat16)
        # post_feedforward_layernorm -> (+ residual) -> next layer's input norm
        # (or the final model norm after the last layer)
        w_next = (params["layers"][i + 1]["input_ln"] if i + 1 < nl
                  else params["final_ln"])
        x, residual = pallas_norm_add_norm(
            mlp, residual, gw(layer["post_ff_ln"]), gw(w_next), eps)

    hidden = x                                   # final-norm'ed hidden states

    # Pooler(LAST, normalize=False): last token of each sequence, then score.
    last_idx = jnp.cumsum(jnp.asarray(seq_lens, jnp.int32)) - 1
    last_hidden = hidden[last_idx].astype(jnp.float32)
    # Tiny [num_seqs, hidden] x [hidden, num_labels] GEMV; lane-sparse for
    # Pallas and off the hot path, so keep it in plain XLA.
    scores = jnp.dot(last_hidden, params["score"].astype(jnp.float32))
    return scores


# ---------------------------- parameter init ----------------------------------
def init_params(key, cfg):
    H, KV, D = cfg["num_heads"], cfg["num_kv_heads"], cfg["head_dim"]
    hid, inter = cfg["hidden_size"], cfg["intermediate_size"]

    def nrm(k, shape, scale=0.02, dtype=jnp.bfloat16):
        return (scale * jax.random.normal(k, shape, dtype=jnp.float32)).astype(dtype)

    key, k_embed, k_score, k_final = jax.random.split(key, 4)
    params = {
        "embed": nrm(k_embed, (cfg["vocab_size"], hid), 1.0, jnp.bfloat16),
        "score": nrm(k_score, (hid, cfg["num_labels"]), 0.02, jnp.float32),
        "final_ln": nrm(k_final, (hid,), 0.1, jnp.float32),
        "layers": [],
    }
    for _ in range(cfg["num_layers"]):
        key, *lk = jax.random.split(key, 10)
        params["layers"].append({
            "qkv": nrm(lk[0], (hid, (H + 2 * KV) * D)),
            "o": nrm(lk[1], (H * D, hid)),
            "gate": nrm(lk[2], (hid, inter)),
            "up": nrm(lk[3], (hid, inter)),
            "down": nrm(lk[4], (inter, hid)),
            "input_ln": nrm(lk[5], (hid,), 0.1, jnp.float32),
            "post_attn_ln": nrm(lk[6], (hid,), 0.1, jnp.float32),
            "pre_ff_ln": nrm(lk[7], (hid,), 0.1, jnp.float32),
            "post_ff_ln": nrm(lk[8], (hid,), 0.1, jnp.float32),
        })
    return params


# --------------------------------- main ----------------------------------------
if __name__ == "__main__":
    cfg = dict(
        vocab_size=256,
        hidden_size=64,
        num_layers=2,
        num_heads=4,
        num_kv_heads=2,
        head_dim=16,
        intermediate_size=128,
        num_labels=3,
        rms_norm_eps=1e-6,
        rope_theta=10000.0,
        query_pre_attn_scalar=16,
        attn_logit_softcapping=50.0,
        sliding_window=4,
    )

    root = jax.random.PRNGKey(0)
    k_par, k_ids = jax.random.split(root)
    params = init_params(k_par, cfg)

    seq_lens = [5, 7]                              # packed ragged batch of 2 sequences
    total_tokens = sum(seq_lens)
    input_ids = jax.random.randint(k_ids, (total_tokens,), 0, cfg["vocab_size"],
                                   dtype=jnp.int32)
    positions = jnp.concatenate(
        [jnp.arange(L, dtype=jnp.int32) for L in seq_lens])
    seg_ids = jnp.concatenate(
        [jnp.full((L,), s, dtype=jnp.int32) for s, L in enumerate(seq_lens)])

    scores = forward(params, input_ids, positions, seg_ids, seq_lens, cfg)
    scores = jax.block_until_ready(scores)
    assert scores.shape == (len(seq_lens), cfg["num_labels"])
    assert bool(jnp.all(jnp.isfinite(scores)))
    print("KERNEL_OK")
</pallas_src>

<mosaic_0001>
module attributes {stable_mosaic.version = 11 : i64} {
  func.func @_rmsnorm_kernel(%arg0: i32, %arg1: memref<12x64xbf16, #tpu.memory_space<vmem>>, %arg2: memref<1x64xf32, #tpu.memory_space<vmem>>, %arg3: memref<12x64xbf16, #tpu.memory_space<vmem>>) attributes {dimension_semantics = [#tpu.dimension_semantics<parallel>], iteration_bounds = array<i64: 1>, scalar_prefetch = 0 : i64, scratch_operands = 0 : i64, tpu.core_type = #tpu.core_type<tc>, window_params = [{transform_indices = @transform_0, window_bounds = array<i64: 12, 64>}, {pipeline_mode = #tpu.pipeline_mode<synchronous>, transform_indices = @transform_1, window_bounds = array<i64: 1, 64>}, {transform_indices = @transform_2, window_bounds = array<i64: 12, 64>}]} {
    %c0 = arith.constant 0 : index
    %c0_0 = arith.constant 0 : index
    %0 = vector.load %arg1[%c0, %c0_0] : memref<12x64xbf16, #tpu.memory_space<vmem>>, vector<12x64xbf16>
    %1 = arith.extf %0 : vector<12x64xbf16> to vector<12x64xf32>
    %2 = arith.mulf %1, %1 : vector<12x64xf32>
    %cst = arith.constant dense<0.000000e+00> : vector<12xf32>
    %3 = vector.multi_reduction <add>, %2, %cst [1] : vector<12x64xf32> to vector<12xf32>
    %4 = vector.shape_cast %3 : vector<12xf32> to vector<12x1xf32>
    %cst_1 = arith.constant 6.400000e+01 : f32
    %5 = vector.broadcast %cst_1 : f32 to vector<12x1xf32>
    %6 = arith.divf %4, %5 : vector<12x1xf32>
    %cst_2 = arith.constant 9.99999997E-7 : f32
    %7 = vector.broadcast %cst_2 : f32 to vector<12x1xf32>
    %8 = arith.addf %6, %7 : vector<12x1xf32>
    %9 = math.rsqrt %8 : vector<12x1xf32>
    %10 = vector.broadcast %9 : vector<12x1xf32> to vector<12x64xf32>
    %11 = arith.mulf %1, %10 : vector<12x64xf32>
    %c0_3 = arith.constant 0 : index
    %c0_4 = arith.constant 0 : index
    %12 = vector.load %arg2[%c0_3, %c0_4] : memref<1x64xf32, #tpu.memory_space<vmem>>, vector<1x64xf32>
    %13 = vector.broadcast %12 : vector<1x64xf32> to vector<12x64xf32>
    %14 = arith.mulf %11, %13 : vector<12x64xf32>
    %15 = arith.truncf %14 : vector<12x64xf32> to vector<12x64xbf16>
    %c0_5 = arith.constant 0 : index
    %c0_6 = arith.constant 0 : index
    %16 = vector.load %arg3[%c0_5, %c0_6] : memref<12x64xbf16, #tpu.memory_space<vmem>>, vector<12x64xbf16>
    tpu.vector_store %arg3[%c0_5, %c0_6], %15 {strides = array<i32>} : memref<12x64xbf16, #tpu.memory_space<vmem>>, vector<12x64xbf16>,
    return
  }
  func.func @transform_0(%arg0: i32) -> (i32, i32) {
    %c0_i32 = arith.constant 0 : i32
    %c0_i32_0 = arith.constant 0 : i32
    return %arg0, %c0_i32 : i32, i32
  }
  func.func @transform_1(%arg0: i32) -> (i32, i32) {
    %c0_i32 = arith.constant 0 : i32
    %c0_i32_0 = arith.constant 0 : i32
    %c0_i32_1 = arith.constant 0 : i32
    return %c0_i32, %c0_i32_0 : i32, i32
  }
  func.func @transform_2(%arg0: i32) -> (i32, i32) {
    %c0_i32 = arith.constant 0 : i32
    %c0_i32_0 = arith.constant 0 : i32
    return %arg0, %c0_i32 : i32, i32
  }
}

</mosaic_0001>

<bundles_post_ra>
// kernel: tpu_custom_call.1
= control target key start
LH: loop header
LB: loop body
LE: loop exit
PB: predicated region body
PF: predicated region fallthrough
CT: control target
= control target key end

     0   :  { %7 = vsyncpa [#allocation3], 0  ;;  %s249_s0 = inlined_call_operand.hbm [shape: bf16[12,64], index: 0, kind: input, shape index: {}]   ;;  %s250_s1 = inlined_call_operand.hbm [shape: f32[1,64], index: 1, kind: input, shape index: {}]   ;;  %s251_s2 = inlined_call_operand.hbm [shape: bf16[12,64], index: 2, kind: output, shape index: {}]  }
   0x1   :  { %8 = vsyncpa [#allocation6], 0 }
   0x2   :  { %9 = vsyncpa [#allocation4], 0  ;;  %s14_s11 = sshll.u32 %s249_s0, 4  ;;  %s211_s12 = smov [#allocation2]   ;;  %s15_s11 = int_to_ptr.hbm [resolvable:$true] %s14_s11 }
   0x3   :  { %s16_s13 = sshll.u32 %s211_s12, 4  ;;  %s28_s16 = sshll.u32 %s250_s1, 4  ;;  %s17_s13 = int_to_ptr.vmem [resolvable:$true] %s16_s13  ;;  %s29_s16 = int_to_ptr.hbm [resolvable:$true] %s28_s16 }
   0x4   :  { %s212_s17 = smov 64   ;;  %s213_s18 = smov 4  }
   0x5   :  { %22 = dma.hbm_to_vmem [thread:$0]  %s15_s11, 128, %s17_s13, [#allocation3], %s212_s17, %s212_s17, %s213_s18  }
   0x6   :  { %s214_s19 = smov [#allocation5]  }
   0x7   :  { %s30_s20 = sshll.u32 %s214_s19, 4  ;;  %s31_s20 = int_to_ptr.vmem [resolvable:$true] %s30_s20 }
   0x8   :  { %33 = dma.hbm_to_vmem [thread:$0]  %s29_s16, 16, %s31_s20, [#allocation6]  }
   0x9   :  { %205 = dma.done.wait [#allocation3], 128  }
   0xa   :  { %206 = vsyncadd [#allocation3], 4294967168 }
   0xb   :  { %207 = dma.done.wait [#allocation6], 16  }
   0xc   :  { %208 = vsyncadd [#allocation6], 4294967280  ;;  %v42_v0 = vld [vmem:[#allocation2] sm:$0xf]  ;;  %v43_v1 = vld [vmem:[#allocation2 + $0x4] sm:$0x3] }
   0xd   :  { %v44_v2 = vunpack.c.l.bf16 %v42_v0  ;;  %vm48_vm0 = vcmask 523264   ;;  %v45_v4 = vunpack.c.l.bf16 %v43_v1  ;;  %vm52_vm1 = vcmask 519168   ;;  %v126_v29 = vld [vmem:[#allocation5] ss:$0 sm:$0xff]  ;;  %s216_s0 = smov [#allocation7]   ;;  %s106_s23 = sshll.u32 %s251_s2, 4  ;;  %s107_s23 = int_to_ptr.hbm [resolvable:$true] %s106_s23 }
   0xe   :  { %v215_v8 = vmov 64.0   ;;  %s104_s1 = sshll.u32 %s216_s0, 4  ;;  %vm98_vm9 = vcmask 517120   ;;  %s105_s1 = int_to_ptr.vmem [resolvable:$true] %s104_s1 }
   0xf   :  { %v46_v3 = vmul.f32 %v44_v2, %v44_v2  ;;  %v47_v6 = vmul.f32 %v45_v4, %v45_v4  ;;  %127 = vrcp.f32 %v215_v8 }
  0x11   :  { %v49_v5 = vsel %vm48_vm0, %v46_v3, 0.0  ;;  %v53_v7 = vsel %vm52_vm1, %v47_v6, 0.0 }
  0x12   :  { %50 = vadd.xlane.f32.xlu0 %v49_v5 }
  0x15   :  { %v128_v9 = vpop.eup %127 }
  0x16   :  { %v57_v10 = vmul.f32 64.0, %v128_v9  ;;  %vm61_vm2 = vweird.f32 %v128_v9 }
  0x18   :  { %v58_v11 = vsub.f32 1.0, %v57_v10 }
  0x1a   :  { %54 = vadd.xlane.f32.xlu0 %v53_v7  ;;  %v59_v12 = vmul.f32 %v128_v9, %v58_v11 }
  0x1c   :  { %v60_v13 = vadd.f32 %v128_v9, %v59_v12 }
  0x1e   :  { %v62_v14 = vsel %vm61_vm2, %v128_v9, %v60_v13 }
  0x85   :  { %v51_v15 = vpop.xlane.xlu0 %50 }
  0x86   :  { %v63_v16 = vmul.f32 %v62_v14, %v51_v15 }
  0x88   :  { %v65_v17 = vadd.f32 1e-06, %v63_v16 }
  0x8a   :  { %129 = vrsqrt.f32 %v65_v17  ;;  %vm73_vm4 = vweird.f32 %v65_v17 }
  0x8d   :  { %v55_v18 = vpop.xlane.xlu0 %54 }
  0x8e   :  { %v64_v19 = vmul.f32 %v62_v14, %v55_v18 }
  0x90   :  { %v130_v20 = vpop.eup %129  ;;  %v66_v21 = vadd.f32 1e-06, %v64_v19 }
  0x91   :  { %v68_v22 = vmul.f32 %v130_v20, %v65_v17  ;;  %vm74_vm3 = vweird.f32 %v130_v20 }
  0x92   :  { %131 = vrsqrt.f32 %v66_v21  ;;  %vm75_vm5 = vmor %vm73_vm4, %vm74_vm3  ;;  %vm83_vm7 = vweird.f32 %v66_v21 }
  0x93   :  { %v69_v23 = vmul.f32 %v130_v20, %v68_v22 }
  0x95   :  { %v70_v24 = vmul.f32 0.5, %v69_v23 }
  0x97   :  { %v71_v25 = vsub.f32 1.5, %v70_v24 }
  0x98   :  { %v132_v26 = vpop.eup %131 }
  0x99   :  { %v72_v27 = vmul.f32 %v130_v20, %v71_v25  ;;  %v78_v28 = vmul.f32 %v132_v26, %v66_v21  ;;  %vm84_vm6 = vweird.f32 %v132_v26 }
  0x9a   :  { %vm85_vm8 = vmor %vm83_vm7, %vm84_vm6 }
  0x9b   :  { %v76_v30 = vsel %vm75_vm5, %v130_v20, %v72_v27  ;;  %v79_v31 = vmul.f32 %v132_v26, %v78_v28 }
  0x9c   :  { %v87_v32 = vmul.f32 %v76_v30, %v44_v2 }
  0x9d   :  { %v80_v33 = vmul.f32 0.5, %v79_v31 }
  0x9e   :  { %v93_v34 = vmul.f32 %v126_v29, %v87_v32 }
  0x9f   :  { %v81_v35 = vsub.f32 1.5, %v80_v33 }
  0xa0   :  { %v95_v36 = vpack.c.bf16 %v93_v34, %v93_v34 }
  0xa1   :  { %v82_v37 = vmul.f32 %v132_v26, %v81_v35 }
  0xa2   :  { %97 = vst.msk [vmem:[#allocation7] sm:$0xf] %vm52_vm1, %v95_v36 }
  0xa3   :  { %v86_v38 = vsel %vm85_vm8, %v132_v26, %v82_v37 }
  0xa4   :  { %v88_v39 = vmul.f32 %v86_v38, %v45_v4 }
  0xa6   :  { %v94_v40 = vmul.f32 %v126_v29, %v88_v39 }
  0xa8   :  { %v96_v41 = vpack.c.bf16 %v94_v40, %v94_v40 }
  0xaa   :  { %99 = vst.msk [vmem:[#allocation7 + $0x4] sm:$0x3] %vm98_vm9, %v96_v41 }
  0xab   :  { %112 = dma.vmem_to_hbm [thread:$0]  %s105_s1, 128, %s107_s23, [#allocation4], %s212_s17, %s212_s17, %s213_s18  }
  0xac   :  { %209 = dma.done.wait [#allocation4], 128  }
  0xad   :  { %210 = vsyncadd [#allocation4], 4294967168 }
  0xae   :  { %117 = vsyncpa [#allocation3], 1 }
  0xaf   :  { %118 = vsyncpa [#allocation6], 1 }
  0xb0   :  { %119 = vsyncpa [#allocation4], 1 }

</bundles_post_ra>
